<compile_context>
chip_gen: v5e
topology: v5e:2x2
jax: 0.10.0
libtpu: 0.0.40
codegen_flags: <defaults>
</compile_context>

<pallas_src>
import functools

import jax
import jax.numpy as jnp
from jax import lax
from jax.experimental import pallas as pl
from jax.experimental.pallas import tpu as pltpu


def _round_up(x, m):
    return ((x + m - 1) // m) * m


def _vmem_capacity_bytes():
    try:
        return int(pltpu.get_tpu_info().vmem_capacity_bytes)
    except Exception:
        return 64 * 1024 * 1024  # conservative (v7x-sized) fallback


# --------------------------------------------------------------------------- #
# Prologue: one-shot L2 normalization (rsqrt on the EUP).  Only ONE normalized
# matrix is emitted; 1/T is applied to the f32 logits in the main kernel.
# Zero (padded) rows stay exactly zero.
# --------------------------------------------------------------------------- #
def _normalize_kernel(x_ref, o_ref, *, eps):
    x = x_ref[...].astype(jnp.float32)                       # [T, D]
    ssq = jnp.sum(x * x, axis=-1, keepdims=True)             # [T, 1]
    r = lax.rsqrt(jnp.maximum(ssq, eps * eps))                # x / max(||x||, eps)
    o_ref[...] = (x * r).astype(o_ref.dtype)


def _partial_rowsum(x, tile_k, tile_q):
    # [TK, TQ] -> [8, TQ]: vreg-height partial sums only (pure VPU adds); the
    # cross-sublane 8 -> 1 collapse is deferred to the finalize step.
    return jnp.sum(x.reshape(tile_k // 8, 8, tile_q), axis=0)


# --------------------------------------------------------------------------- #
# Main streaming kernel.  grid = (anchor tiles, contrast tiles); the contrast
# axis is the innermost "arbitrary" reduction, the anchor axis is "parallel".
# Slab s[j, i] = k_j . q_i (both unit norm), shape [TK, TQ], so per-anchor
# reductions are sublane reductions and all per-anchor state is lane-dense.
# --------------------------------------------------------------------------- #
def _supcon_kernel(*args, inv_temp, temp_over_base, eps, pad_denom,
                   tile_q, tile_k, k_resident, f32_matmul):
    if k_resident:
        (f_ref, lrow_ref, lcol_ref, pcnt_ref, out_ref, denom_acc, pos_acc) = args
    else:
        (q_ref, k_ref, lrow_ref, lcol_ref, pcnt_ref, out_ref, denom_acc, pos_acc) = args

    qi = pl.program_id(0)
    ki = pl.program_id(1)
    nk = pl.num_programs(1)

    @pl.when(ki == 0)
    def _init():
        denom_acc[...] = jnp.zeros_like(denom_acc)
        pos_acc[...] = jnp.zeros_like(pos_acc)

    if k_resident:
        # Whole (normalized) feature matrix is VMEM-resident: slice BOTH operands
        # from it (no per-step q/k DMA).
        q_tile = f_ref[pl.ds(pl.multiple_of(qi * tile_q, tile_q), tile_q), :]
        k_tile = f_ref[pl.ds(pl.multiple_of(ki * tile_k, tile_k), tile_k), :]
    else:
        q_tile = q_ref[...]                                   # streamed [TQ, D] block
        k_tile = k_ref[...]                                   # streamed [TK, D] block

    prec = lax.Precision.HIGHEST if f32_matmul else lax.Precision.DEFAULT
    # s[j, i] = k_j . q_i  -> [TK, TQ]
    s = lax.dot_general(k_tile, q_tile, (((1,), (1,)), ((), ())),
                        preferred_element_type=jnp.float32, precision=prec)
    # Row max of the full similarity matrix is the diagonal == 1 (L2-normalized,
    # anchor set == contrast set), so the stabilizing shift is a constant.
    logits = (s - 1.0) * inv_temp                             # [TK, TQ]

    e = jnp.exp(logits)                                       # [TK, TQ]
    # Positive-pair contributions with a single select (sentinel labels on padded
    # contrast rows never match real anchor labels).
    pos = jnp.where(lcol_ref[...] == lrow_ref[...], logits, 0.0)

    denom_acc[...] += _partial_rowsum(e, tile_k, tile_q)      # [8, TQ]
    pos_acc[...] += _partial_rowsum(pos, tile_k, tile_q)      # [8, TQ]

    # Exact self-contrast (diagonal) removal, only where the anchor and contrast
    # index ranges overlap (at most ~1 contrast tile per anchor tile).  Kept exact
    # (subtract what was added) so it cancels matmul rounding on s_ii as well.
    q_start = qi * tile_q
    k_start = ki * tile_k
    overlaps = jnp.logical_and(q_start < k_start + tile_k,
                               k_start < q_start + tile_q)

    @pl.when(overlaps)
    def _drop_diag():
        rg = k_start + lax.broadcasted_iota(jnp.int32, (tile_k, tile_q), 0)
        cg = q_start + lax.broadcasted_iota(jnp.int32, (tile_k, tile_q), 1)
        on_diag = rg == cg
        de = jnp.where(on_diag, e, 0.0)
        dp = jnp.where(on_diag, pos, 0.0)
        denom_acc[...] -= _partial_rowsum(de, tile_k, tile_q)
        pos_acc[...] -= _partial_rowsum(dp, tile_k, tile_q)

    @pl.when(ki == nk - 1)
    def _finalize():
        # Cross-sublane collapses happen once per anchor tile, not per step.
        denom = jnp.sum(denom_acc[...], axis=0, keepdims=True)          # [1, TQ]
        # Padded contrast rows are exactly zero -> logits == -1/T exactly; remove
        # their constant contribution here instead of masking the slab each step.
        denom = denom - pad_denom
        pos_sum = jnp.sum(pos_acc[...], axis=0, keepdims=True)          # [1, TQ]
        pos_cnt = pcnt_ref[...]                                         # [1, TQ]
        log_denom = jnp.log(denom + eps)                                 # reference's +eps
        # sum(mask * log_prob) = pos_sum - pos_cnt * log(denom)
        mean_log_prob_pos = (pos_sum - pos_cnt * log_denom) / pos_cnt
        out_ref[...] = (-temp_over_base) * mean_log_prob_pos             # lane-dense loss


def sup_contrast_loss(features, labels, *, temperature=0.07, contrast_mode='all',
                      base_temperature=0.07, eps=1e-8, use_bf16_matmul=True,
                      contrast_resident=None):
    """features: [bsz, n_views, D]; labels: [bsz] int. Returns scalar loss.

    Faithful to the PyTorch module's forward (which behaves as contrast_mode='all').
    NOTE: pos_cnt == 0 (n_views == 1 with a unique label) yields NaN, like PyTorch.
    """
    del contrast_mode  # the reference forward ignores it (always 'all' behavior)
    if abs(temperature) < eps:
        raise ValueError('Illegal temperature: abs({}) < 1e-8'.format(temperature))

    bsz, n_views, d = features.shape
    n = bsz * n_views
    labels = labels.reshape(-1).astype(jnp.int32)
    if labels.size != bsz:
        raise ValueError('Num of labels does not match num of features')

    inv_temp = 1.0 / float(temperature)
    mm_dtype = jnp.bfloat16 if use_bf16_matmul else jnp.float32
    mm_bytes = 2 if use_bf16_matmul else 4

    # torch.cat(torch.unbind(features, dim=1), dim=0) -> view-major stacking.
    cf = jnp.transpose(features, (1, 0, 2)).reshape(n, d).astype(jnp.float32)
    labels_full = jnp.tile(labels, n_views)                              # [n] int32

    # Positives per anchor (excluding self) from a bsz x bsz label histogram.
    counts = jnp.sum(labels[:, None] == labels[None, :], axis=1)         # [bsz]
    pos_cnt = jnp.tile((n_views * counts - 1).astype(jnp.float32), n_views)

    # ---- padding & tile selection (review: large tiles, never degrade to 128) ----
    d_pad = _round_up(d, 128)
    if n <= 512:
        n_pad = _round_up(n, 128)
        tile_q = n_pad                       # single anchor / contrast tile
        tile_k = n_pad
    else:
        n_pad = _round_up(n, 512)
        tile_q = 512
        # NOTE(v7x megacore): an odd anchor-tile count leaves one core a tail tile;
        # we keep tile_q=512 anyway since halving it would halve MXU N-width.
        tile_k = 1024 if n_pad % 1024 == 0 else 512
    num_pad = n_pad - n

    # Sentinel labels on padded rows never match any real label.
    sentinel = int(jnp.iinfo(jnp.int32).min)
    feats = jnp.pad(cf, ((0, num_pad), (0, d_pad - d)))
    lab_pad = jnp.pad(labels_full, (0, num_pad), constant_values=sentinel)
    lab_row = lab_pad.reshape(1, n_pad)                                  # anchors (lane-dense)
    lab_col = lab_pad.reshape(n_pad, 1)                                  # contrasts
    pos_cnt_p = jnp.pad(pos_cnt, (0, num_pad), constant_values=1.0).reshape(1, n_pad)

    # Padded (all-zero) contrast rows contribute exactly exp(-1/T) each to every
    # anchor's denominator; subtract that constant once at finalize.
    pad_denom = float(num_pad) * float(jnp.exp(jnp.float32(-inv_temp)))

    # ---- per-generation VMEM budgeting ----
    vmem_cap = _vmem_capacity_bytes()
    feat_bytes = n_pad * d_pad * mm_bytes
    if contrast_resident is None:
        # ~10.6 MiB on v7x (64 MiB VMEM), ~21.3 MiB on v5e/v6e (128 MiB VMEM).
        contrast_resident = feat_bytes <= vmem_cap // 6

    # ---- prologue: one-shot normalize (single output matrix) ----
    pro_tile = tile_q
    pro_vmem = int(min(vmem_cap * 3 // 4,
                       max(16 * 1024 * 1024, 4 * pro_tile * d_pad * (4 + mm_bytes))))
    feat_n = pl.pallas_call(
        functools.partial(_normalize_kernel, eps=float(eps)),
        grid=(n_pad // pro_tile,),
        in_specs=[pl.BlockSpec((pro_tile, d_pad), lambda i: (i, 0))],
        out_specs=pl.BlockSpec((pro_tile, d_pad), lambda i: (i, 0)),
        out_shape=jax.ShapeDtypeStruct((n_pad, d_pad), mm_dtype),
        compiler_params=pltpu.CompilerParams(
            dimension_semantics=("parallel",), vmem_limit_bytes=pro_vmem),
    )(feats)

    # ---- main streaming kernel ----
    grid = (n_pad // tile_q, n_pad // tile_k)

    lab_row_spec = pl.BlockSpec((1, tile_q), lambda qi, ki: (0, qi))
    lab_col_spec = pl.BlockSpec((tile_k, 1), lambda qi, ki: (ki, 0))
    pcnt_spec = pl.BlockSpec((1, tile_q), lambda qi, ki: (0, qi))
    out_spec = pl.BlockSpec((1, tile_q), lambda qi, ki: (0, qi))

    if contrast_resident:
        in_specs = [pl.BlockSpec((n_pad, d_pad), lambda qi, ki: (0, 0)),
                    lab_row_spec, lab_col_spec, pcnt_spec]
        inputs = (feat_n, lab_row, lab_col, pos_cnt_p)
        operand_bytes = 2 * feat_bytes                         # budget 2 pipeline buffers
    else:
        in_specs = [pl.BlockSpec((tile_q, d_pad), lambda qi, ki: (qi, 0)),
                    pl.BlockSpec((tile_k, d_pad), lambda qi, ki: (ki, 0)),
                    lab_row_spec, lab_col_spec, pcnt_spec]
        inputs = (feat_n, feat_n, lab_row, lab_col, pos_cnt_p)
        operand_bytes = 2 * (tile_q + tile_k) * d_pad * mm_bytes

    slab_bytes = 8 * tile_k * tile_q * 4                       # s/e/pos + compiler temporaries
    misc_bytes = 4 * 1024 * 1024                               # labels / counts / output blocks
    vmem_limit = int(min(vmem_cap * 3 // 4,
                         max(32 * 1024 * 1024,
                             operand_bytes + slab_bytes + misc_bytes)))

    kernel = functools.partial(
        _supcon_kernel,
        inv_temp=float(inv_temp),
        temp_over_base=float(temperature) / float(base_temperature),
        eps=float(eps),
        pad_denom=pad_denom,
        tile_q=int(tile_q), tile_k=int(tile_k),
        k_resident=bool(contrast_resident),
        f32_matmul=not use_bf16_matmul)

    per_anchor = pl.pallas_call(
        kernel,
        grid=grid,
        in_specs=in_specs,
        out_specs=out_spec,
        out_shape=jax.ShapeDtypeStruct((1, n_pad), jnp.float32),
        scratch_shapes=[pltpu.VMEM((8, tile_q), jnp.float32),   # denom partial sums
                        pltpu.VMEM((8, tile_q), jnp.float32)],  # pos_sum partial sums
        compiler_params=pltpu.CompilerParams(
            dimension_semantics=("parallel", "arbitrary"),
            vmem_limit_bytes=vmem_limit),
    )(*inputs)

    # mean over all N anchors (== loss.view(anchor_count, bsz).mean()); padded
    # anchor lanes are dropped here.
    return jnp.sum(per_anchor[0, :n]) / n


def _reference_loss(features, labels, temperature=0.07, base_temperature=0.07,
                    eps=1e-8):
    """Pure-JAX reference mirroring the PyTorch forward (HIGHEST-precision matmul)."""
    bsz, n_views, d = features.shape
    norm = jnp.linalg.norm(features, axis=-1, keepdims=True)
    feats = features / jnp.maximum(norm, eps)
    cf = jnp.transpose(feats, (1, 0, 2)).reshape(n_views * bsz, d)
    sim = jnp.matmul(cf, cf.T, precision=jax.lax.Precision.HIGHEST) / temperature
    logits = sim - jnp.max(sim, axis=1, keepdims=True)
    lab = jnp.tile(labels.reshape(-1), n_views)
    mask = (lab[:, None] == lab[None, :]).astype(jnp.float32)
    logits_mask = 1.0 - jnp.eye(n_views * bsz, dtype=jnp.float32)
    mask = mask * logits_mask
    exp_logits = jnp.exp(logits) * logits_mask
    log_prob = logits - jnp.log(exp_logits.sum(1, keepdims=True) + eps)
    mean_log_prob_pos = (mask * log_prob).sum(1) / mask.sum(1)
    loss = -(temperature / base_temperature) * mean_log_prob_pos
    return loss.mean()


if __name__ == "__main__":
    key = jax.random.PRNGKey(0)
    kf, kl, kf2, kl2 = jax.random.split(key, 4)

    # Case 1: tiny single-tile problem (bsz=8, n_views=2, D=32) -> n_pad=128, grid (1,1).
    bsz, n_views, d = 8, 2, 32
    features = jax.random.normal(kf, (bsz, n_views, d), dtype=jnp.float32)
    labels = jax.random.randint(kl, (bsz,), 0, 4, dtype=jnp.int32)
    ref = _reference_loss(features, labels)

    # f32 validation path (HIGHEST-precision MXU matmul in kernel and reference)
    loss_f32 = jax.block_until_ready(
        sup_contrast_loss(features, labels, use_bf16_matmul=False))
    assert jnp.allclose(loss_f32, ref, rtol=2e-3, atol=2e-3), (loss_f32, ref)

    # fast path (bf16 MXU operands, f32 accumulation)
    loss_bf16 = jax.block_until_ready(sup_contrast_loss(features, labels))
    assert jnp.allclose(loss_bf16, ref, rtol=5e-2, atol=5e-2), (loss_bf16, ref)

    # Case 2: multi-tile 3x3 grid (n=1536, tile_q=tile_k=512), resident and streamed.
    bsz2, n_views2, d2 = 768, 2, 40
    features2 = jax.random.normal(kf2, (bsz2, n_views2, d2), dtype=jnp.float32)
    labels2 = jax.random.randint(kl2, (bsz2,), 0, 10, dtype=jnp.int32)
    ref2 = _reference_loss(features2, labels2)

    loss2_res = jax.block_until_ready(sup_contrast_loss(features2, labels2))
    assert jnp.allclose(loss2_res, ref2, rtol=5e-2, atol=5e-2), (loss2_res, ref2)

    loss2_str = jax.block_until_ready(
        sup_contrast_loss(features2, labels2, contrast_resident=False))
    assert jnp.allclose(loss2_str, ref2, rtol=5e-2, atol=5e-2), (loss2_str, ref2)

    print("KERNEL_OK")
</pallas_src>

<mosaic_0001>
module attributes {stable_mosaic.version = 11 : i64} {
  func.func @_normalize_kernel(%arg0: i32, %arg1: memref<128x128xf32, #tpu.memory_space<vmem>>, %arg2: memref<128x128xf32, #tpu.memory_space<vmem>>) attributes {dimension_semantics = [#tpu.dimension_semantics<parallel>], iteration_bounds = array<i64: 1>, scalar_prefetch = 0 : i64, scratch_operands = 0 : i64, tpu.core_type = #tpu.core_type<tc>, window_params = [{transform_indices = @transform_0, window_bounds = array<i64: 128, 128>}, {transform_indices = @transform_1, window_bounds = array<i64: 128, 128>}]} {
    %c0 = arith.constant 0 : index
    %c0_0 = arith.constant 0 : index
    %0 = vector.load %arg1[%c0, %c0_0] : memref<128x128xf32, #tpu.memory_space<vmem>>, vector<128x128xf32>
    %1 = arith.mulf %0, %0 : vector<128x128xf32>
    %cst = arith.constant dense<0.000000e+00> : vector<128xf32>
    %2 = vector.multi_reduction <add>, %1, %cst [1] : vector<128x128xf32> to vector<128xf32>
    %3 = vector.shape_cast %2 : vector<128xf32> to vector<128x1xf32>
    %cst_1 = arith.constant 1.000000e-16 : f32
    %4 = vector.broadcast %cst_1 : f32 to vector<128x1xf32>
    %5 = arith.maximumf %3, %4 : vector<128x1xf32>
    %6 = math.rsqrt %5 : vector<128x1xf32>
    %7 = vector.broadcast %6 : vector<128x1xf32> to vector<128x128xf32>
    %8 = arith.mulf %0, %7 : vector<128x128xf32>
    %c0_2 = arith.constant 0 : index
    %c0_3 = arith.constant 0 : index
    %9 = vector.load %arg2[%c0_2, %c0_3] : memref<128x128xf32, #tpu.memory_space<vmem>>, vector<128x128xf32>
    tpu.vector_store %arg2[%c0_2, %c0_3], %8 {strides = array<i32>} : memref<128x128xf32, #tpu.memory_space<vmem>>, vector<128x128xf32>,
    return
  }
  func.func @transform_0(%arg0: i32) -> (i32, i32) {
    %c0_i32 = arith.constant 0 : i32
    %c0_i32_0 = arith.constant 0 : i32
    return %arg0, %c0_i32 : i32, i32
  }
  func.func @transform_1(%arg0: i32) -> (i32, i32) {
    %c0_i32 = arith.constant 0 : i32
    %c0_i32_0 = arith.constant 0 : i32
    return %arg0, %c0_i32 : i32, i32
  }
}

</mosaic_0001>

<bundles_post_ra>
// kernel: tpu_custom_call.1
= control target key start
LH: loop header
LB: loop body
LE: loop exit
PB: predicated region body
PF: predicated region fallthrough
CT: control target
= control target key end

     0   :  { %6 = vsyncpa [#allocation3], 0  ;;  %s628_s0 = inlined_call_operand.hbm [shape: f32[128,128], index: 0, kind: input, shape index: {}]   ;;  %s629_s1 = inlined_call_operand.hbm [shape: f32[128,128], index: 1, kind: output, shape index: {}]  }
   0x1   :  { %7 = vsyncpa [#allocation4], 0  ;;  %s12_s8 = sshll.u32 %s628_s0, 4  ;;  %s404_s9 = smov [#allocation2]   ;;  %s13_s8 = int_to_ptr.hbm [resolvable:$true] %s12_s8 }
   0x2   :  { %s14_s10 = sshll.u32 %s404_s9, 4  ;;  %s405_s11 = smov 128   ;;  %s15_s10 = int_to_ptr.vmem [resolvable:$true] %s14_s10 }
   0x3   :  { %s406_s12 = smov 8  }
   0x4   :  { %20 = dma.hbm_to_vmem [thread:$0]  %s13_s8, 2048, %s15_s10, [#allocation3], %s405_s11, %s405_s11, %s406_s12  }
   0x5   :  { %400 = dma.done.wait [#allocation3], 2048  }
   0x6   :  { %401 = vsyncadd [#allocation3], 4294965248  ;;  %v424_v0 = vld [vmem:[#allocation2 + $0x20] sm:$0xff]  ;;  %v426_v1 = vld [vmem:[#allocation2 + $0x10] sm:$0xff]  ;;  %s407_s0 = smov [#allocation5]   ;;  %s303_s16 = sshll.u32 %s629_s1, 4  ;;  %s304_s16 = int_to_ptr.hbm [resolvable:$true] %s303_s16 }
   0x7   :  { %v428_v2 = vld [vmem:[#allocation2] sm:$0xff]  ;;  %v45_v3 = vmul.f32 %v424_v0, %v424_v0  ;;  %v43_v4 = vmul.f32 %v426_v1, %v426_v1  ;;  %v436_v6 = vld [vmem:[#allocation2 + $0x28] sm:$0xff]  ;;  %v438_v7 = vld [vmem:[#allocation2 + $0x18] sm:$0xff]  ;;  %s301_s13 = sshll.u32 %s407_s0, 4  ;;  %s302_s13 = int_to_ptr.vmem [resolvable:$true] %s301_s13 }
   0x8   :  { %v41_v5 = vmul.f32 %v428_v2, %v428_v2  ;;  %v440_v8 = vld [vmem:[#allocation2 + $0x8] sm:$0xff]  ;;  %v46_v9 = vmul.f32 %v436_v6, %v436_v6  ;;  %v44_v10 = vmul.f32 %v438_v7, %v438_v7  ;;  %v448_v12 = vld [vmem:[#allocation2 + $0x40] sm:$0xff]  ;;  %v450_v13 = vld [vmem:[#allocation2 + $0x38] sm:$0xff] }
   0x9   :  { %65 = vadd.xlane.f32.xlu2 %v45_v3  ;;  %61 = vadd.xlane.f32.xlu1 %v43_v4  ;;  %v42_v11 = vmul.f32 %v440_v8, %v440_v8  ;;  %v452_v14 = vld [vmem:[#allocation2 + $0x30] sm:$0xff]  ;;  %v49_v15 = vmul.f32 %v448_v12, %v448_v12  ;;  %v48_v16 = vmul.f32 %v450_v13, %v450_v13  ;;  %v460_v18 = vld [vmem:[#allocation2 + $0x58] sm:$0xff]  ;;  %v464_v20 = vld [vmem:[#allocation2 + $0x48] sm:$0xff] }
   0xa   :  { %57 = vadd.xlane.f32.xlu0 %v41_v5  ;;  %v47_v17 = vmul.f32 %v452_v14, %v452_v14  ;;  %v462_v19 = vld [vmem:[#allocation2 + $0x50] sm:$0xff]  ;;  %v52_v21 = vmul.f32 %v460_v18, %v460_v18  ;;  %v50_v23 = vmul.f32 %v464_v20, %v464_v20  ;;  %v474_v25 = vld [vmem:[#allocation2 + $0x68] sm:$0xff]  ;;  %v476_v26 = vld [vmem:[#allocation2 + $0x60] sm:$0xff] }
   0xb   :  { %v51_v22 = vmul.f32 %v462_v19, %v462_v19  ;;  %v472_v24 = vld [vmem:[#allocation2 + $0x70] sm:$0xff]  ;;  %v54_v28 = vmul.f32 %v474_v25, %v474_v25  ;;  %v53_v29 = vmul.f32 %v476_v26, %v476_v26  ;;  %v484_v30 = vld [vmem:[#allocation2 + $0x78] sm:$0xff] }
   0xc   :  { %v55_v27 = vmul.f32 %v472_v24, %v472_v24  ;;  %v56_v31 = vmul.f32 %v484_v30, %v484_v30 }
  0x11   :  { %67 = vadd.xlane.f32.xlu2 %v46_v9  ;;  %63 = vadd.xlane.f32.xlu1 %v44_v10 }
  0x12   :  { %59 = vadd.xlane.f32.xlu0 %v42_v11 }
  0x19   :  { %73 = vadd.xlane.f32.xlu2 %v49_v15  ;;  %71 = vadd.xlane.f32.xlu1 %v48_v16 }
  0x1a   :  { %69 = vadd.xlane.f32.xlu0 %v47_v17 }
  0x21   :  { %79 = vadd.xlane.f32.xlu2 %v52_v21  ;;  %77 = vadd.xlane.f32.xlu1 %v51_v22 }
  0x22   :  { %75 = vadd.xlane.f32.xlu0 %v50_v23 }
  0x29   :  { %85 = vadd.xlane.f32.xlu2 %v55_v27  ;;  %83 = vadd.xlane.f32.xlu1 %v54_v28 }
  0x2a   :  { %81 = vadd.xlane.f32.xlu0 %v53_v29 }
  0x32   :  { %87 = vadd.xlane.f32.xlu0 %v56_v31 }
  0x7c   :  { %v66_v32 = vpop.xlane.xlu2 %65  ;;  %v62_v33 = vpop.xlane.xlu1 %61 }
  0x7d   :  { %v93_v34 = vmax.f32 %v66_v32, 1e-16  ;;  %v91_v35 = vmax.f32 %v62_v33, 1e-16  ;;  %v58_v36 = vpop.xlane.xlu0 %57 }
  0x7e   :  { %v89_v37 = vmax.f32 %v58_v36, 1e-16 }
  0x7f   :  { %320 = vrsqrt.f32 %v93_v34  ;;  %vm151_vm0 = vweird.f32 %v93_v34  ;;  %vm131_vm2 = vweird.f32 %v91_v35 }
  0x80   :  { %322 = vrsqrt.f32 %v91_v35  ;;  %vm111_vm4 = vweird.f32 %v89_v37 }
  0x81   :  { %324 = vrsqrt.f32 %v89_v37 }
  0x84   :  { %v68_v38 = vpop.xlane.xlu2 %67  ;;  %v64_v39 = vpop.xlane.xlu1 %63 }
  0x85   :  { %v321_v40 = vpop.eup %320  ;;  %v488_v41 = vmax.f32 %v68_v38, 1e-16  ;;  %v490_v42 = vmax.f32 %v64_v39, 1e-16  ;;  %v60_v43 = vpop.xlane.xlu0 %59 }
  0x86   :  { %v323_v44 = vpop.eup %322  ;;  %v146_v45 = vmul.f32 %v321_v40, %v93_v34  ;;  %v492_v46 = vmax.f32 %v60_v43, 1e-16  ;;  %vm152_vm1 = vweird.f32 %v321_v40 }
  0x87   :  { %v325_v47 = vpop.eup %324  ;;  %v126_v48 = vmul.f32 %v323_v44, %v91_v35  ;;  %326 = vrsqrt.f32 %v488_v41  ;;  %vm132_vm3 = vweird.f32 %v323_v44  ;;  %vm153_vm6 = vmor %vm151_vm0, %vm152_vm1  ;;  %vm161_vm9 = vweird.f32 %v488_v41 }
  0x88   :  { %v147_v49 = vmul.f32 %v321_v40, %v146_v45  ;;  %v106_v50 = vmul.f32 %v325_v47, %v89_v37  ;;  %328 = vrsqrt.f32 %v490_v42  ;;  %vm112_vm5 = vweird.f32 %v325_v47  ;;  %vm133_vm7 = vmor %vm131_vm2, %vm132_vm3 }
  0x89   :  { %v127_v51 = vmul.f32 %v323_v44, %v126_v48  ;;  %330 = vrsqrt.f32 %v492_v46  ;;  %vm113_vm8 = vmor %vm111_vm4, %vm112_vm5  ;;  %vm141_vm10 = vweird.f32 %v490_v42  ;;  %vm121_vm15 = vweird.f32 %v492_v46 }
  0x8a   :  { %v148_v52 = vmul.f32 0.5, %v147_v49  ;;  %v107_v53 = vmul.f32 %v325_v47, %v106_v50 }
  0x8b   :  { %v128_v54 = vmul.f32 0.5, %v127_v51 }
  0x8c   :  { %v149_v55 = vsub.f32 1.5, %v148_v52  ;;  %v108_v56 = vmul.f32 0.5, %v107_v53  ;;  %v74_v57 = vpop.xlane.xlu2 %73  ;;  %v72_v58 = vpop.xlane.xlu1 %71 }
  0x8d   :  { %v497_v59 = vpop.eup %326  ;;  %v129_v60 = vsub.f32 1.5, %v128_v54  ;;  %v499_v61 = vmax.f32 %v74_v57, 1e-16  ;;  %v70_v62 = vpop.xlane.xlu0 %69  ;;  %v512_v15 = vmax.f32 %v72_v58, 1e-16 }
  0x8e   :  { %v501_v63 = vpop.eup %328  ;;  %v150_v3 = vmul.f32 %v321_v40, %v149_v55  ;;  %v109_v4 = vsub.f32 1.5, %v108_v56  ;;  %v156_v5 = vmul.f32 %v497_v59, %v488_v41  ;;  %vm162_vm11 = vweird.f32 %v497_v59 }
  0x8f   :  { %v505_v9 = vpop.eup %330  ;;  %v130_v10 = vmul.f32 %v323_v44, %v129_v60  ;;  %v136_v11 = vmul.f32 %v501_v63, %v490_v42  ;;  %332 = vrsqrt.f32 %v499_v61  ;;  %v530_v37 = vmax.f32 %v70_v62, 1e-16  ;;  %vm163_vm14 = vmor %vm161_vm9, %vm162_vm11 }
  0x90   :  { %v154_v16 = vsel %vm153_vm6, %v321_v40, %v150_v3  ;;  %v110_v17 = vmul.f32 %v325_v47, %v109_v4  ;;  %v157_v21 = vmul.f32 %v497_v59, %v156_v5  ;;  %v116_v22 = vmul.f32 %v505_v9, %v492_v46 }
  0x91   :  { %v269_v23 = vmul.f32 %v154_v16, %v424_v0  ;;  %v134_v27 = vsel %vm133_vm7, %v323_v44, %v130_v10  ;;  %v137_v28 = vmul.f32 %v501_v63, %v136_v11  ;;  %334 = vrsqrt.f32 %v512_v15 }
  0x92   :  { %v267_v29 = vmul.f32 %v134_v27, %v426_v1  ;;  %v114_v31 = vsel %vm113_vm8, %v325_v47, %v110_v17  ;;  %v158_v32 = vmul.f32 0.5, %v157_v21  ;;  %v117_v33 = vmul.f32 %v505_v9, %v116_v22 }
  0x93   :  { %285 = vst [vmem:[#allocation5 + $0x20] sm:$0xff] %v269_v23  ;;  %v265_v34 = vmul.f32 %v114_v31, %v428_v2  ;;  %v138_v35 = vmul.f32 0.5, %v137_v28  ;;  %vm142_vm12 = vweird.f32 %v501_v63  ;;  %vm122_vm13 = vweird.f32 %v505_v9 }
  0x94   :  { %283 = vst [vmem:[#allocation5 + $0x10] sm:$0xff] %v267_v29  ;;  %v159_v0 = vsub.f32 1.5, %v158_v32  ;;  %v118_v36 = vmul.f32 0.5, %v117_v33  ;;  %v80_v1 = vpop.xlane.xlu2 %79  ;;  %v78_v38 = vpop.xlane.xlu1 %77  ;;  %336 = vrsqrt.f32 %v530_v37  ;;  %vm143_vm0 = vmor %vm141_vm10, %vm142_vm12  ;;  %vm191_vm2 = vweird.f32 %v499_v61 }
  0x95   :  { %v333_v39 = vpop.eup %332  ;;  %281 = vst [vmem:[#allocation5] sm:$0xff] %v265_v34  ;;  %v139_v40 = vsub.f32 1.5, %v138_v35  ;;  %v533_v2 = vmax.f32 %v80_v1, 1e-16  ;;  %v535_v43 = vmax.f32 %v78_v38, 1e-16  ;;  %v76_v44 = vpop.xlane.xlu0 %75  ;;  %vm123_vm1 = vmor %vm121_vm15, %vm122_vm13  ;;  %vm181_vm4 = vweird.f32 %v512_v15 }
  0x96   :  { %v160_v45 = vmul.f32 %v497_v59, %v159_v0  ;;  %v119_v47 = vsub.f32 1.5, %v118_v36  ;;  %v186_v48 = vmul.f32 %v333_v39, %v499_v61  ;;  %v559_v58 = vmax.f32 %v76_v44, 1e-16 }
  0x97   :  { %v140_v49 = vmul.f32 %v501_v63, %v139_v40  ;;  %338 = vrsqrt.f32 %v533_v2  ;;  %v335_v53 = vpop.eup %334  ;;  %vm192_vm3 = vweird.f32 %v333_v39  ;;  %vm171_vm7 = vweird.f32 %v530_v37 }
  0x98   :  { %v164_v50 = vsel %vm163_vm14, %v497_v59, %v160_v45  ;;  %v120_v51 = vmul.f32 %v505_v9, %v119_v47  ;;  %v187_v52 = vmul.f32 %v333_v39, %v186_v48  ;;  %340 = vrsqrt.f32 %v535_v43  ;;  %vm193_vm5 = vmor %vm191_vm2, %vm192_vm3 }
  0x99   :  { %v270_v41 = vmul.f32 %v164_v50, %v436_v6  ;;  %v144_v54 = vsel %vm143_vm0, %v501_v63, %v140_v49  ;;  %v176_v42 = vmul.f32 %v335_v53, %v512_v15  ;;  %342 = vrsqrt.f32 %v559_v58 }
  0x9a   :  { %v268_v46 = vmul.f32 %v144_v54, %v438_v7  ;;  %v124_v55 = vsel %vm123_vm1, %v505_v9, %v120_v51  ;;  %v188_v56 = vmul.f32 0.5, %v187_v52  ;;  %v337_v63 = vpop.eup %336  ;;  %vm182_vm6 = vweird.f32 %v335_v53 }
  0x9b   :  { %286 = vst [vmem:[#allocation5 + $0x28] sm:$0xff] %v270_v41  ;;  %v266_v57 = vmul.f32 %v124_v55, %v440_v8  ;;  %v177_v6 = vmul.f32 %v335_v53, %v176_v42  ;;  %v166_v10 = vmul.f32 %v337_v63, %v530_v37  ;;  %vm221_vm8 = vweird.f32 %v533_v2  ;;  %vm183_vm10 = vmor %vm181_vm4, %vm182_vm6 }
  0x9c   :  { %284 = vst [vmem:[#allocation5 + $0x18] sm:$0xff] %v268_v46  ;;  %v189_v59 = vsub.f32 1.5, %v188_v56  ;;  %v86_v60 = vpop.xlane.xlu2 %85  ;;  %v84_v62 = vpop.xlane.xlu1 %83  ;;  %vm211_vm9 = vweird.f32 %v535_v43  ;;  %vm172_vm11 = vweird.f32 %v337_v63  ;;  %vm201_vm15 = vweird.f32 %v559_v58 }
  0x9d   :  { %282 = vst [vmem:[#allocation5 + $0x8] sm:$0xff] %v266_v57  ;;  %v563_v7 = vmax.f32 %v86_v60, 1e-16  ;;  %v565_v3 = vmax.f32 %v84_v62, 1e-16  ;;  %v82_v4 = vpop.xlane.xlu0 %81  ;;  %v339_v8 = vpop.eup %338  ;;  %v178_v9 = vmul.f32 0.5, %v177_v6  ;;  %v167_v22 = vmul.f32 %v337_v63, %v166_v10  ;;  %vm173_vm14 = vmor %vm171_vm7, %vm172_vm11 }
  0x9e   :  { %v190_v5 = vmul.f32 %v333_v39, %v189_v59  ;;  %v341_v11 = vpop.eup %340  ;;  %v216_v16 = vmul.f32 %v339_v8, %v533_v2  ;;  %vm222_vm12 = vweird.f32 %v339_v8 }
  0x9f   :  { %344 = vrsqrt.f32 %v563_v7  ;;  %v179_v21 = vsub.f32 1.5, %v178_v9  ;;  %v206_v23 = vmul.f32 %v341_v11, %v535_v43  ;;  %v168_v29 = vmul.f32 0.5, %v167_v22  ;;  %v343_v32 = vpop.eup %342  ;;  %vm223_vm0 = vmor %vm221_vm8, %vm222_vm12 }
  0xa0   :  { %v194_v17 = vsel %vm193_vm5, %v333_v39, %v190_v5  ;;  %v217_v28 = vmul.f32 %v339_v8, %v216_v16  ;;  %346 = vrsqrt.f32 %v565_v3  ;;  %v196_v36 = vmul.f32 %v343_v32, %v559_v58 }
  0xa1   :  { %v273_v27 = vmul.f32 %v194_v17, %v448_v12  ;;  %v180_v61 = vmul.f32 %v335_v53, %v179_v21  ;;  %v207_v31 = vmul.f32 %v341_v11, %v206_v23  ;;  %v583_v12 = vmax.f32 %v82_v4, 1e-16 }
  0xa2   :  { %v218_v33 = vmul.f32 0.5, %v217_v28  ;;  %v169_v35 = vsub.f32 1.5, %v168_v29  ;;  %vm212_vm13 = vweird.f32 %v341_v11  ;;  %v197_v45 = vmul.f32 %v343_v32, %v196_v36 }
  0xa3   :  { %289 = vst [vmem:[#allocation5 + $0x40] sm:$0xff] %v273_v27  ;;  %v184_v34 = vsel %vm183_vm10, %v335_v53, %v180_v61  ;;  %v208_v0 = vmul.f32 0.5, %v207_v31  ;;  %348 = vrsqrt.f32 %v583_v12  ;;  %vm213_vm1 = vmor %vm211_vm9, %vm212_vm13  ;;  %vm202_vm2 = vweird.f32 %v343_v32 }
  0xa4   :  { %v272_v38 = vmul.f32 %v184_v34, %v450_v13  ;;  %v219_v39 = vsub.f32 1.5, %v218_v33  ;;  %v170_v15 = vmul.f32 %v337_v63, %v169_v35  ;;  %v198_v52 = vmul.f32 0.5, %v197_v45  ;;  %vm203_vm5 = vmor %vm201_vm15, %vm202_vm2 }
  0xa5   :  { %v345_v1 = vpop.eup %344  ;;  %v88_v40 = vpop.xlane.xlu0 %87  ;;  %v209_v44 = vsub.f32 1.5, %v208_v0  ;;  %vm251_vm3 = vweird.f32 %v563_v7  ;;  %vm241_vm7 = vweird.f32 %v565_v3  ;;  %vm231_vm11 = vweird.f32 %v583_v12 }
  0xa6   :  { %v246_v47 = vmul.f32 %v345_v1, %v563_v7  ;;  %v347_v48 = vpop.eup %346  ;;  %288 = vst [vmem:[#allocation5 + $0x38] sm:$0xff] %v272_v38  ;;  %v220_v49 = vmul.f32 %v339_v8, %v219_v39  ;;  %v593_v13 = vmax.f32 %v88_v40, 1e-16  ;;  %v174_v50 = vsel %vm173_vm14, %v337_v63, %v170_v15 }
  0xa7   :  { %v210_v51 = vmul.f32 %v341_v11, %v209_v44  ;;  %v271_v41 = vmul.f32 %v174_v50, %v452_v14  ;;  %v236_v37 = vmul.f32 %v347_v48, %v565_v3  ;;  %v199_v56 = vsub.f32 1.5, %v198_v52 }
  0xa8   :  { %v247_v53 = vmul.f32 %v345_v1, %v246_v47  ;;  %v224_v54 = vsel %vm223_vm0, %v339_v8, %v220_v49  ;;  %350 = vrsqrt.f32 %v593_v13  ;;  %vm252_vm4 = vweird.f32 %v345_v1 }
  0xa9   :  { %v276_v46 = vmul.f32 %v224_v54, %v460_v18  ;;  %v214_v55 = vsel %vm213_vm1, %v341_v11, %v210_v51  ;;  %v349_v2 = vpop.eup %348  ;;  %287 = vst [vmem:[#allocation5 + $0x30] sm:$0xff] %v271_v41  ;;  %v237_v14 = vmul.f32 %v347_v48, %v236_v37  ;;  %v200_v43 = vmul.f32 %v343_v32, %v199_v56  ;;  %vm253_vm6 = vmor %vm251_vm3, %vm252_vm4 }
  0xaa   :  { %v248_v42 = vmul.f32 0.5, %v247_v53  ;;  %v275_v57 = vmul.f32 %v214_v55, %v462_v19  ;;  %v226_v6 = vmul.f32 %v349_v2, %v583_v12  ;;  %vm242_vm8 = vweird.f32 %v347_v48 }
  0xab   :  { %292 = vst [vmem:[#allocation5 + $0x58] sm:$0xff] %v276_v46  ;;  %v238_v18 = vmul.f32 0.5, %v237_v14  ;;  %v204_v60 = vsel %vm203_vm5, %v343_v32, %v200_v43  ;;  %vm243_vm9 = vmor %vm241_vm7, %vm242_vm8  ;;  %vm232_vm10 = vweird.f32 %v349_v2  ;;  %vm261_vm14 = vweird.f32 %v593_v13 }
  0xac   :  { %v249_v59 = vsub.f32 1.5, %v248_v42  ;;  %291 = vst [vmem:[#allocation5 + $0x50] sm:$0xff] %v275_v57  ;;  %v227_v19 = vmul.f32 %v349_v2, %v226_v6  ;;  %v274_v63 = vmul.f32 %v204_v60, %v464_v20  ;;  %vm233_vm12 = vmor %vm231_vm11, %vm232_vm10 }
  0xad   :  { %v239_v4 = vsub.f32 1.5, %v238_v18 }
  0xae   :  { %v250_v62 = vmul.f32 %v345_v1, %v249_v59  ;;  %v228_v5 = vmul.f32 0.5, %v227_v19  ;;  %v351_v9 = vpop.eup %350  ;;  %290 = vst [vmem:[#allocation5 + $0x48] sm:$0xff] %v274_v63 }
  0xaf   :  { %v240_v10 = vmul.f32 %v347_v48, %v239_v4  ;;  %v256_v16 = vmul.f32 %v351_v9, %v593_v13  ;;  %vm262_vm13 = vweird.f32 %v351_v9 }
  0xb0   :  { %v254_v8 = vsel %vm253_vm6, %v345_v1, %v250_v62  ;;  %v229_v11 = vsub.f32 1.5, %v228_v5  ;;  %vm263_vm15 = vmor %vm261_vm14, %vm262_vm13 }
  0xb1   :  { %v279_v58 = vmul.f32 %v254_v8, %v472_v24  ;;  %v244_v20 = vsel %vm243_vm9, %v347_v48, %v240_v10  ;;  %v257_v3 = vmul.f32 %v351_v9, %v256_v16 }
  0xb2   :  { %v278_v7 = vmul.f32 %v244_v20, %v474_v25  ;;  %v230_v17 = vmul.f32 %v349_v2, %v229_v11 }
  0xb3   :  { %295 = vst [vmem:[#allocation5 + $0x70] sm:$0xff] %v279_v58  ;;  %v258_v22 = vmul.f32 0.5, %v257_v3 }
  0xb4   :  { %294 = vst [vmem:[#allocation5 + $0x68] sm:$0xff] %v278_v7  ;;  %v234_v21 = vsel %vm233_vm12, %v349_v2, %v230_v17 }
  0xb5   :  { %v277_v24 = vmul.f32 %v234_v21, %v476_v26  ;;  %v259_v23 = vsub.f32 1.5, %v258_v22 }
  0xb7   :  { %293 = vst [vmem:[#allocation5 + $0x60] sm:$0xff] %v277_v24  ;;  %v260_v27 = vmul.f32 %v351_v9, %v259_v23 }
  0xb9   :  { %v264_v25 = vsel %vm263_vm15, %v351_v9, %v260_v27 }
  0xba   :  { %v280_v28 = vmul.f32 %v264_v25, %v484_v30 }
  0xbc   :  { %296 = vst [vmem:[#allocation5 + $0x78] sm:$0xff] %v280_v28 }
  0xbd   :  { %309 = dma.vmem_to_hbm [thread:$0]  %s302_s13, 2048, %s304_s16, [#allocation4], %s405_s11, %s405_s11, %s406_s12  }
  0xbe   :  { %402 = dma.done.wait [#allocation4], 2048  }
  0xbf   :  { %403 = vsyncadd [#allocation4], 4294965248 }
  0xc0   :  { %314 = vsyncpa [#allocation3], 1 }
  0xc1   :  { %315 = vsyncpa [#allocation4], 1 }

</bundles_post_ra>
